<compile_context>
chip_gen: v6e
topology: v6e:2x2x1
jax: 0.10.0
libtpu: 0.0.40
codegen_flags: <defaults>
</compile_context>

<pallas_src>
import functools

import jax
import jax.numpy as jnp
from jax.experimental import pallas as pl
from jax.experimental.pallas import tpu as pltpu


def _round_up(x, m):
    return (x + m - 1) // m * m


def _ds_block_kernel(x_ref, w_ref, b_ref, o_ref, *, q, nb, pqpad, pad_lanes):
    """Fused conv3x3 + ReLU + 2x2 max-pool, one batch block per grid step.

    x_ref: (Cg, Mb)        bf16  Cg = 4*Cin_p rows = (a, b, cin);
                                 Mb = nb*PQpad lanes = flat (n, i, j) phase-split grid
    w_ref: (4*Co8, 4*Cg)   bf16  rows = (pool phase, cout); cols = (shift, a, b, cin)
    b_ref: (Co8, 1)        f32   conv bias
    o_ref: (nb, Co8, PQpad) f32  pooled output on the (i, j) in [0,P)x[0,Q) grid
    """
    cg, mb = x_ref.shape
    co8 = o_ref.shape[1]

    x = x_ref[...]                                                # (Cg, Mb)
    # Tail of zeros so all 4 shifted lane windows are in-bounds (shift <= Q+1).
    xw = jnp.concatenate(
        [x, jnp.zeros((cg, pad_lanes), dtype=x.dtype)], axis=1)   # (Cg, Mb+pad)

    # In-kernel im2col: 4 static lane-shifted views, (ih, iw) in {0,1}^2 ->
    # lane offset ih*Q + iw, stacked on sublanes -> K = 4*Cg.
    xs = jnp.concatenate(
        [xw[:, off:off + mb] for off in (0, 1, q, q + 1)], axis=0)  # (4*Cg, Mb)

    # One MXU GEMM per step: all 4 pool phases at once (stacked on LHS rows).
    r = jnp.dot(w_ref[...], xs, preferred_element_type=jnp.float32)  # (4*Co8, Mb)

    # 2x2 max-pool = max over the 4 phase row-groups (8-aligned sublane slices).
    pooled = jnp.maximum(jnp.maximum(r[0:co8], r[co8:2 * co8]),
                         jnp.maximum(r[2 * co8:3 * co8], r[3 * co8:4 * co8]))

    # bias + ReLU after the pool (both commute with max).
    out = jnp.maximum(pooled + b_ref[...], 0.0)                   # (Co8, Mb) f32

    # Lane-dense, 128-aligned full-width stores (one per batch element).
    for e in range(nb):
        o_ref[e] = out[:, e * pqpad:(e + 1) * pqpad]


def ds_block_forward(x_nchw, w_oihw, bias, *, batch_block=None):
    N, Cin, H, W = x_nchw.shape
    Cout, cin_w, kh_w, kw_w = w_oihw.shape
    assert (cin_w, kh_w, kw_w) == (Cin, 3, 3)
    assert H % 2 == 0 and W % 2 == 0, "MaxPool(2,2, ceil_mode=False) path assumes even H/W"

    H2, W2 = H // 2, W // 2
    P, Q = H2 + 1, W2 + 1              # phase-split grid (holds the conv zero pad)
    PQ = P * Q
    PQpad = _round_up(PQ, 128)         # lane-dense per-batch segment
    Cin_p = _round_up(Cin, 4)          # rows per (a, b) plane; 4*Cin_p % 16 == 0 (bf16 tile)
    Cg = 4 * Cin_p
    Co8 = _round_up(Cout, 8)           # output channels on sublanes (8-granular, NOT 128)
    pad_lanes = _round_up(Q + 1, 128)  # in-kernel zero tail for the shifted views

    # Batch block: aim for >=~256-512 lanes of GEMM M per step, but keep >= 2 grid
    # steps (when N >= 2) so the "parallel" axis shards across v7x's two TCs.
    if batch_block is None:
        batch_block = min(N, max(1, 512 // PQpad))
        if N >= 2:
            batch_block = max(1, min(batch_block, N // 2))
        while N % batch_block:
            batch_block -= 1
    nb = batch_block
    assert N % nb == 0 and nb >= 1

    # ---- input prep: raw-size pad + phase-split transpose + bf16 cast (no im2col) ----
    #   x_flat[(a*2+b)*Cin_p + c, n*PQpad + i*Q + j] = x_pad[n, c, 2i+a, 2j+b]
    xp = jnp.pad(x_nchw, ((0, 0), (0, Cin_p - Cin), (1, 1), (1, 1)))  # (N,Cin_p,H+2,W+2)
    xp = xp.reshape(N, Cin_p, P, 2, Q, 2)                             # (n,c,i,a,j,b)
    xp = xp.transpose(3, 5, 1, 0, 2, 4)                               # (a,b,c,n,i,j)
    xp = xp.reshape(Cg, N, PQ)
    xp = jnp.pad(xp, ((0, 0), (0, 0), (0, PQpad - PQ)))
    x_flat = xp.reshape(Cg, N * PQpad).astype(jnp.bfloat16)

    # ---- weight as ONE GEMM LHS: rows = (pool phase hp*2+wp, cout),
    #      cols = (shift ih*2+iw, a, b, cin); zero where the tap doesn't apply ----
    w_lhs = jnp.zeros((4 * Co8, 4 * Cg), jnp.float32)
    for hp in range(2):
        for wp in range(2):
            ph = hp * 2 + wp
            for ih in range(2):
                for iw in range(2):
                    sh = ih * 2 + iw
                    for a in range(2):
                        for b in range(2):
                            kh = 2 * ih + a - hp
                            kw = 2 * iw + b - wp
                            if 0 <= kh <= 2 and 0 <= kw <= 2:
                                r0 = ph * Co8
                                c0 = sh * Cg + (a * 2 + b) * Cin_p
                                w_lhs = w_lhs.at[r0:r0 + Cout, c0:c0 + Cin].set(
                                    w_oihw[:, :, kh, kw])
    w_lhs = w_lhs.astype(jnp.bfloat16)
    b_col = jnp.pad(bias, (0, Co8 - Cout)).reshape(Co8, 1).astype(jnp.float32)

    kernel = functools.partial(_ds_block_kernel, q=Q, nb=nb, pqpad=PQpad,
                               pad_lanes=pad_lanes)

    out_padded = pl.pallas_call(
        kernel,
        out_shape=jax.ShapeDtypeStruct((N, Co8, PQpad), jnp.float32),
        grid=(N // nb,),
        in_specs=[
            pl.BlockSpec((Cg, nb * PQpad), lambda n: (0, n)),
            pl.BlockSpec((4 * Co8, 4 * Cg), lambda n: (0, 0)),
            pl.BlockSpec((Co8, 1), lambda n: (0, 0)),
        ],
        out_specs=pl.BlockSpec((nb, Co8, PQpad), lambda n: (n, 0, 0)),
        compiler_params=pltpu.CompilerParams(
            dimension_semantics=("parallel",),
            vmem_limit_bytes=32 * 1024 * 1024,
        ),
    )(x_flat, w_lhs, b_col)

    # Small real-size epilogue: drop the phase-split pad row/col and lane padding,
    # emitting the consumer's NCHW layout directly.
    out = out_padded[:, :Cout, :PQ].reshape(N, Cout, P, Q)[:, :, :H2, :W2]
    return out


def reference_forward(x, w, b):
    y = jax.lax.conv_general_dilated(
        x, w, window_strides=(1, 1), padding=((1, 1), (1, 1)),
        dimension_numbers=("NCHW", "OIHW", "NCHW"))
    y = y + b[None, :, None, None]
    y = jnp.maximum(y, 0.0)
    y = jax.lax.reduce_window(y, -jnp.inf, jax.lax.max,
                              (1, 1, 2, 2), (1, 1, 2, 2), "VALID")
    return y


if __name__ == "__main__":
    key = jax.random.PRNGKey(0)
    kx, kw, kb = jax.random.split(key, 3)

    # Small shapes consistent with DsBlock(in_channels=4, out_channels=8).
    N, Cin, H, W = 2, 4, 16, 16
    Cout = 8

    x = jax.random.normal(kx, (N, Cin, H, W), dtype=jnp.float32)
    fan_in = Cin * 3 * 3
    w = jax.random.normal(kw, (Cout, Cin, 3, 3), dtype=jnp.float32) / jnp.sqrt(fan_in)
    b = jax.random.normal(kb, (Cout,), dtype=jnp.float32) * 0.1

    out = jax.block_until_ready(jax.jit(ds_block_forward)(x, w, b))
    ref = reference_forward(x, w, b)

    assert out.shape == (N, Cout, H // 2, W // 2), out.shape
    # bf16 GEMM operands (f32 accumulation) -> loosened tolerance vs the f32 reference.
    assert jnp.allclose(out, ref, atol=5e-2, rtol=5e-2), \
        float(jnp.max(jnp.abs(out - ref)))
    print("KERNEL_OK")
</pallas_src>

<mosaic_0001>
module attributes {stable_mosaic.version = 11 : i64} {
  func.func @_ds_block_kernel(%arg0: i32, %arg1: memref<16x128xbf16, #tpu.memory_space<vmem>>, %arg2: memref<32x64xbf16, #tpu.memory_space<vmem>>, %arg3: memref<8x1xf32, #tpu.memory_space<vmem>>, %arg4: memref<1x8x128xf32, #tpu.memory_space<vmem>>) attributes {dimension_semantics = [#tpu.dimension_semantics<parallel>], iteration_bounds = array<i64: 2>, scalar_prefetch = 0 : i64, scratch_operands = 0 : i64, tpu.core_type = #tpu.core_type<tc>, window_params = [{transform_indices = @transform_0, window_bounds = array<i64: 16, 128>}, {pipeline_mode = #tpu.pipeline_mode<synchronous>, transform_indices = @transform_1, window_bounds = array<i64: 32, 64>}, {pipeline_mode = #tpu.pipeline_mode<synchronous>, transform_indices = @transform_2, window_bounds = array<i64: 8, 1>}, {transform_indices = @transform_3, window_bounds = array<i64: 1, 8, 128>}]} {
    %c0 = arith.constant 0 : index
    %c0_0 = arith.constant 0 : index
    %0 = vector.load %arg1[%c0, %c0_0] : memref<16x128xbf16, #tpu.memory_space<vmem>>, vector<16x128xbf16>
    %cst = arith.constant 0.000000e+00 : bf16
    %1 = vector.broadcast %cst : bf16 to vector<16x128xbf16>
    %2 = tpu.concatenate %0, %1 in 1 : vector<16x128xbf16>, vector<16x128xbf16> -> vector<16x256xbf16>
    %3 = vector.extract_strided_slice %2 {offsets = [0, 0], sizes = [16, 128], strides = [1, 1]} : vector<16x256xbf16> to vector<16x128xbf16>
    %4 = vector.extract_strided_slice %2 {offsets = [0, 1], sizes = [16, 128], strides = [1, 1]} : vector<16x256xbf16> to vector<16x128xbf16>
    %5 = vector.extract_strided_slice %2 {offsets = [0, 9], sizes = [16, 128], strides = [1, 1]} : vector<16x256xbf16> to vector<16x128xbf16>
    %6 = vector.extract_strided_slice %2 {offsets = [0, 10], sizes = [16, 128], strides = [1, 1]} : vector<16x256xbf16> to vector<16x128xbf16>
    %7 = tpu.concatenate %3, %4, %5, %6 in 0 : vector<16x128xbf16>, vector<16x128xbf16>, vector<16x128xbf16>, vector<16x128xbf16> -> vector<64x128xbf16>
    %c0_1 = arith.constant 0 : index
    %c0_2 = arith.constant 0 : index
    %8 = vector.load %arg2[%c0_1, %c0_2] : memref<32x64xbf16, #tpu.memory_space<vmem>>, vector<32x64xbf16>
    %cst_3 = arith.constant dense<0.000000e+00> : vector<32x128xf32>
    %9 = tpu.matmul %8, %7, %cst_3 {dimension_numbers = #tpu.dot_dimension_numbers<[1], [0], [0], [1], [0, 0, 1, 1], [], []>} : vector<32x64xbf16>, vector<64x128xbf16>, vector<32x128xf32> -> vector<32x128xf32>
    %10 = vector.extract_strided_slice %9 {offsets = [0, 0], sizes = [8, 128], strides = [1, 1]} : vector<32x128xf32> to vector<8x128xf32>
    %11 = vector.extract_strided_slice %9 {offsets = [8, 0], sizes = [8, 128], strides = [1, 1]} : vector<32x128xf32> to vector<8x128xf32>
    %12 = arith.maximumf %10, %11 : vector<8x128xf32>
    %13 = vector.extract_strided_slice %9 {offsets = [16, 0], sizes = [8, 128], strides = [1, 1]} : vector<32x128xf32> to vector<8x128xf32>
    %14 = vector.extract_strided_slice %9 {offsets = [24, 0], sizes = [8, 128], strides = [1, 1]} : vector<32x128xf32> to vector<8x128xf32>
    %15 = arith.maximumf %13, %14 : vector<8x128xf32>
    %16 = arith.maximumf %12, %15 : vector<8x128xf32>
    %c0_4 = arith.constant 0 : index
    %c0_5 = arith.constant 0 : index
    %17 = vector.load %arg3[%c0_4, %c0_5] : memref<8x1xf32, #tpu.memory_space<vmem>>, vector<8x1xf32>
    %18 = vector.broadcast %17 : vector<8x1xf32> to vector<8x128xf32>
    %19 = arith.addf %16, %18 : vector<8x128xf32>
    %cst_6 = arith.constant 0.000000e+00 : f32
    %20 = vector.broadcast %cst_6 : f32 to vector<8x128xf32>
    %21 = arith.maximumf %19, %20 : vector<8x128xf32>
    %c0_7 = arith.constant 0 : index
    %c0_8 = arith.constant 0 : index
    %c0_9 = arith.constant 0 : index
    %22 = vector.load %arg4[%c0_7, %c0_8, %c0_9] : memref<1x8x128xf32, #tpu.memory_space<vmem>>, vector<1x8x128xf32>
    %23 = vector.shape_cast %22 : vector<1x8x128xf32> to vector<8x128xf32>
    %24 = vector.shape_cast %21 : vector<8x128xf32> to vector<1x8x128xf32>
    tpu.vector_store %arg4[%c0_7, %c0_8, %c0_9], %24 {strides = array<i32>} : memref<1x8x128xf32, #tpu.memory_space<vmem>>, vector<1x8x128xf32>,
    return
  }
  func.func @transform_0(%arg0: i32) -> (i32, i32) {
    %c0_i32 = arith.constant 0 : i32
    %c0_i32_0 = arith.constant 0 : i32
    return %c0_i32, %arg0 : i32, i32
  }
  func.func @transform_1(%arg0: i32) -> (i32, i32) {
    %c0_i32 = arith.constant 0 : i32
    %c0_i32_0 = arith.constant 0 : i32
    %c0_i32_1 = arith.constant 0 : i32
    return %c0_i32, %c0_i32_0 : i32, i32
  }
  func.func @transform_2(%arg0: i32) -> (i32, i32) {
    %c0_i32 = arith.constant 0 : i32
    %c0_i32_0 = arith.constant 0 : i32
    %c0_i32_1 = arith.constant 0 : i32
    return %c0_i32, %c0_i32_0 : i32, i32
  }
  func.func @transform_3(%arg0: i32) -> (i32, i32, i32) {
    %c0_i32 = arith.constant 0 : i32
    %c0_i32_0 = arith.constant 0 : i32
    %c0_i32_1 = arith.constant 0 : i32
    return %arg0, %c0_i32, %c0_i32_0 : i32, i32, i32
  }
}

</mosaic_0001>

<bundles_post_ra>
// kernel: ds_block_forward.1
= control target key start
LH: loop header
LB: loop body
LE: loop exit
PB: predicated region body
PF: predicated region fallthrough
CT: control target
= control target key end

     0   :  { %s502_s12 = smov 0   ;;  %s504_s13 = smov 0   ;;  %s567_s0 = inlined_call_operand.vmem [shape: bf16[16,256], index: 0, kind: input, shape index: {}]   ;;  %s568_s1 = inlined_call_operand.vmem [shape: bf16[32,64], index: 1, kind: input, shape index: {}]   ;;  %s569_s2 = inlined_call_operand.vmem [shape: f32[8,1], index: 2, kind: input, shape index: {}]   ;;  %s570_s3 = inlined_call_operand.vmem [shape: f32[2,8,128], index: 3, kind: output, shape index: {}]  }
   0x1   :  { %s506_s14 = smov 0  }
   0x2 LB: > { %s388_s15 = sadd.s32 4294967295, %s476_s14   ;;  %s519_s16 = sadd.s32 1, %s476_s14   ;;  %s476_s14 = sphi %s506_s14, %s573_s14   ;;  %s472_s13 = sphi %s504_s13, %s572_s13   ;;  %s468_s12 = sphi %s502_s12, %s571_s12  }
   0x3   : > { %s17_s17 = ssub.s32 %s476_s14, %s519_s16  ;;  %s20_s18 = sadd.s32 1, %s472_s13 }
   0x4   : > { %p18_p0 = scmp.eq.s32.totalorder %s17_s17, 0  ;;  %p27_p1 = scmp.ne.s32.totalorder %s472_s13, %s468_s12 }
   0x5   : > { %p28_p2 = scmp.eq.s32.totalorder %s476_s14, 0  ;;  %p391_p4 = scmp.ge.s32.totalorder %s476_s14, 2 }
   0x6   : > { %s528_s19 = scalar_select %p18_p0, %s472_s13, %s20_s18  }
   0x7   : > { %p29_p3 = por %p28_p2, %p27_p1  ;;  %127 = sbr.rel (%p391_p4) target bundleno = 17 (0x11), region = 24 }
   0xc   : > { %130 = sbr.rel (!%p29_p3) target bundleno = 17 (0x11), region = 28  ;;  %s132_s20 = sand.u32 (%p29_p3), 1, %s472_s13  }
   0xd   : > { %s393_s21 = sshll.u32 (%p29_p3), %s476_s14, 2  ;;  %s392_s22 = sshll.u32 (%p29_p3), %s132_s20, 3 }
   0xe   : > { %s136_s25 = scalar_lea.vmem (%p29_p3), %s567_s0, %s393_s21  ;;  %s134_s26 = scalar_lea.vmem (%p29_p3), [#allocation2], %s392_s22 }
   0xf   : > { %v153_v0 = vld [vmem:[%s136_s25] sm:$0xf] (%p29_p3)  ;;  %v155_v1 = vld [vmem:[%s136_s25 + $0x8] sm:$0xf] (%p29_p3) }
  0x10   : > { %154 = vst [vmem:[%s134_s26] sm:$0xf] (%p29_p3), %v153_v0  ;;  %156 = vst [vmem:[%s134_s26 + $0x4] sm:$0xf] (%p29_p3), %v155_v1 }
  0x11 PF: > { %p394_p5 = scmp.ge.s32.totalorder %s476_s14, 1  ;;  %p183_p6 = scmp.lt.s32.totalorder %s476_s14, 3 }
  0x13   : > { %p184_p7 = pnand %p394_p5, %p183_p6 }
  0x14   : > { %s190_s27 = sand.u32 (!%p184_p7), 1, %s468_s12   ;;  %s479_s28 = smov (!%p184_p7), 119  }
  0x15   : > { %187 = sbr.rel (%p184_p7) target bundleno = 372 (0x174), region = 69  ;;  %s395_s29 = sshll.u32 (!%p184_p7), %s190_s27, 3 }
  0x16   : > { %s192_s30 = scalar_lea.vmem (!%p184_p7), [#allocation2], %s395_s29  ;;  %s480_s4 = smov (!%p184_p7), 118  }
  0x17   : > { %s481_s5 = smov (!%p184_p7), 127   ;;  %p212_p8 = scmp.lt.s32.totalorder (!%p184_p7), %s388_s15, 1 }
  0x1a   : > { %v478_v2 = vmov 0   ;;  %v451_v3 = vld [vmem:[%s192_s30] sm:$0xff]   ;;  %vm261_vm0 = vcmask 523264   ;;  %vm244_vm1 = vcmask 965632   ;;  %vm237_vm2 = vcmask 973824   ;;  %s575_s15 = smov (!%p212_p8, %s388_s15), 1 }
  0x1b   : > { %235 = vrot.lane.b32.xlu1 %v478_v2, %s479_s28  ;;  %450 = vset.pattern.permute.xlu0 %v478_v2  ;;  %v452_v4 = vld [vmem:[%s568_s1] sm:$0xff]   ;;  %vm230_vm3 = vcmask 1039360   ;;  %v453_v15 = vld [vmem:[%s568_s1 + $0x8] sm:$0xff]   ;;  %s396_s12 = sshll.u32 %s575_s15, 3 }
  0x1c   : > { %240 = vrot.lane.b32.xlu0 %v451_v3, %s480_s4  ;;  %418 = vmatprep.mubr.msk.bf16.mxu0 %vm261_vm0, %v452_v4  ;;  %v320_v5 = vld [vmem:[%s569_s2] sm:$0xff]  ;;  %s215_s20 = scalar_lea.vmem %s570_s3, %s396_s12 }
  0x1f   : > { %233 = vrot.lane.b32.xlu1 %v451_v3, %s479_s28 }
  0x20   : > { %242 = vrot.lane.b32.xlu0 %v478_v2, %s480_s4 }
  0x23   : > { %228 = vrot.lane.b32.xlu1 %v478_v2, %s481_s5 }
  0x24   : > { %226 = vrot.lane.b32.xlu0 %v451_v3, %s481_s5 }
  0x28   : > { %323 = vperm.xlu0 %450, %v320_v5  }
  0x8d   : > { %v236_v6 = vpop.permute.xlu1 %235 }
  0x8e   : > { %v241_v7 = vpop.permute.xlu0 %240 }
  0x91   : > { %v234_v8 = vpop.permute.xlu1 %233 }
  0x92   : > { %v243_v9 = vpop.permute.xlu0 %242  ;;  %v238_v12 = vsel %vm237_vm2, %v234_v8, %v236_v6 }
  0x93   : > { %v245_v10 = vsel %vm244_vm1, %v241_v7, %v243_v9 }
  0x94   : > { %410 = vmatprep.subr.bf16.mxu0 %v245_v10 }
  0x95   : > { %v229_v11 = vpop.permute.xlu1 %228  ;;  %411 = vmatpush3.bf16.msra.mxu0 %v245_v10 }
  0x96   : > { %412 = vmatprep.subr.bf16.mxu0 %v238_v12  ;;  %v227_v13 = vpop.permute.xlu0 %226 }
  0x97   : > { %v231_v14 = vsel %vm230_vm3, %v227_v13, %v229_v11 }
  0x99   : > { %413 = vmatpush3.bf16.msra.mxu0 %v238_v12 }
  0x9a   : > { %414 = vmatprep.subr.bf16.mxu0 %v231_v14 }
  0x9d   : > { %415 = vmatpush3.bf16.msra.mxu0 %v231_v14 }
  0x9e   : > { %416 = vmatprep.subr.bf16.mxu0 %v451_v3 }
  0xa1   : > { %417 = vmatpush3.bf16.msra.mxu0 %v451_v3 }
  0xa3   : > { %v324_v22 = vpop.permute.xlu0 %323 }
  0xa4   : > { %419 = vmatmul.mubr.msk.bf16.vlgmr.msra.gmra.mxu0 %vm261_vm0, %v453_v15 }
 0x164   : > { %v420_v16 = vpop.f32.mrf.mxu0 }
 0x166   : > { %v302_v17 = vpop.f32.mrf.mxu0 }
 0x168   : > { %v421_v18 = vpop.f32.mrf.mxu0 }
 0x169   : > { %v318_v20 = vmax.f32 %v420_v16, %v421_v18 }
 0x16a   : > { %v305_v19 = vpop.f32.mrf.mxu0 }
 0x16b   : > { %v317_v21 = vmax.f32 %v302_v17, %v305_v19 }
 0x16d   : > { %v319_v23 = vmax.f32 %v317_v21, %v318_v20 }
 0x16f   : > { %v326_v24 = vadd.f32 %v324_v22, %v319_v23 }
 0x171   : > { %v327_v25 = vmax.f32 %v326_v24, 0.0 }
 0x173   : > { %328 = vst [vmem:[%s215_s20] sm:$0xff] %v327_v25 }
 0x174 PF: > { %p10_p9 = scmp.ge.s32.totalorder %s519_s16, 4   ;;  %s571_s12 = smov %s472_s13 }
 0x175   : > { %s572_s13 = smov %s528_s19  ;;  %s573_s14 = smov %s519_s16 }
 0x176   :  { %12 = sbr.rel (!%p10_p9) target bundleno = 2 (0x2), region = 108 }

</bundles_post_ra>
